<compile_context>
chip_gen: v7x
topology: tpu7x:2x2x1
jax: 0.10.0
libtpu: 0.0.40
codegen_flags: <defaults>
</compile_context>

<pallas_src>
import jax
import jax.numpy as jnp
from jax.experimental import pallas as pl
from jax.experimental.pallas import tpu as pltpu


# 256-wide tiles match the 2x256^2 MXU on v6e/v7x; on v5e (4x128^2 MXU) 128 is
# the sweet spot but 256 remains correct (two MXU pushes per tile).
TM_TARGET = 256
TN_TARGET = 256
VMEM_LIMIT_BYTES = 32 * 1024 * 1024  # >= default on all gens, << usage headroom


def _round_up(x, m):
    return ((x + m - 1) // m) * m


def _pick_tile(dim, target, granule):
    """Largest legal tile <= target that divides dim (or the full dim)."""
    if dim <= target:
        return dim            # full-extent block is always legal
    if dim % target == 0:
        return target
    t = (target // granule) * granule
    while t >= granule:
        if dim % t == 0:
            return t
        t -= granule
    return dim                # fall back to full dim (not hit at these shapes)


# ---------------------------------------------------------------------------
# Kernel: bf16 GEMM + bias + ReLU (f32 accumulate) — the per-level conv hot path
# ---------------------------------------------------------------------------
def _gemm_bias_relu_kernel(a_ref, b_ref, bias_ref, o_ref):
    acc = jnp.dot(a_ref[...], b_ref[...], preferred_element_type=jnp.float32)
    acc = acc + bias_ref[...]                       # (1, tn) broadcasts over tm
    o_ref[...] = jnp.maximum(acc, 0.0).astype(o_ref.dtype)


def patchify_conv(x_bf16, weight, bias, stride,
                  tm_target=TM_TARGET, tn_target=TN_TARGET):
    """x_bf16: (B, C, H, W) bf16; weight: (Cout, C, s, s) f32; bias: (Cout,) f32.

    Returns NHWC features (B, H//s, W//s, Cout) in float32.
    """
    B, C, H, W = x_bf16.shape
    Cout = weight.shape[0]
    s = stride
    Hs, Ws = H // s, W // s
    # PyTorch strided conv floors the output size: crop any remainder.
    x = x_bf16[:, :, : Hs * s, : Ws * s]

    # im2col (JAX glue; non-overlapping patches, done in bf16 to halve bytes).
    # Patch flatten order = (C, kh, kw), matching the weight reshape below.
    patches = x.reshape(B, C, Hs, s, Ws, s).transpose(0, 2, 4, 1, 3, 5)
    patches = patches.reshape(B * Hs * Ws, C * s * s)
    w_mat = weight.reshape(Cout, C * s * s).T.astype(jnp.bfloat16)   # (K, Cout)
    bias2 = bias.reshape(1, Cout).astype(jnp.float32)

    M, K = patches.shape
    N = Cout

    # Row (M) tiling: pick tm <= target, pad M up to a multiple of tm so the
    # grid math is exact and VMEM stays bounded for any image size.
    tm = min(tm_target, _round_up(M, 8))
    Mp = _round_up(M, tm)
    if Mp != M:
        patches = jnp.pad(patches, ((0, Mp - M), (0, 0)))

    # Column (N) tiling: Cout in {512, 1024, 2048} is always divisible by 256.
    tn = _pick_tile(N, tn_target, 128)   # lane granule

    out = pl.pallas_call(
        _gemm_bias_relu_kernel,
        out_shape=jax.ShapeDtypeStruct((Mp, N), jnp.float32),
        grid_spec=pltpu.PrefetchScalarGridSpec(
            num_scalar_prefetch=0,
            # N outer, M inner: the (K, tn) weight tile index is constant over
            # the inner M loop so it is not re-DMA'd per step.
            grid=(N // tn, Mp // tm),
            in_specs=[
                pl.BlockSpec((tm, K), lambda j, i: (i, 0)),   # LHS row tile
                pl.BlockSpec((K, tn), lambda j, i: (0, j)),   # weight col tile
                pl.BlockSpec((1, tn), lambda j, i: (0, j)),   # bias tile
            ],
            out_specs=pl.BlockSpec((tm, tn), lambda j, i: (i, j)),
        ),
        compiler_params=pltpu.CompilerParams(
            dimension_semantics=("parallel", "parallel"),
            vmem_limit_bytes=VMEM_LIMIT_BYTES,
        ),
    )(patches, w_mat, bias2)

    if Mp != M:
        out = out[:M]
    # Free reshape: (M, Cout) is already NHWC-ordered; Cout stays lane-dense.
    return out.reshape(B, Hs, Ws, Cout)


# ---------------------------------------------------------------------------
# Mask resize: F.interpolate(m[None].float(), size=(h, w)).to(bool)[0]
# Nearest-neighbor on an exact 0/1 mask == index gather with src = floor(i*in/out).
# Kept as plain JAX per perf review (tiny, MXU-hostile as a Pallas kernel).
# ---------------------------------------------------------------------------
def interpolate_mask_nearest(mask_bool, out_hw):
    B, H, W = mask_bool.shape
    h, w = out_hw
    rows = (jnp.arange(h) * H) // h
    cols = (jnp.arange(w) * W) // w
    return mask_bool[:, rows][:, :, cols]


# ---------------------------------------------------------------------------
# BackboneBase equivalent
# ---------------------------------------------------------------------------
class BackboneBase:
    def __init__(self, key, in_channels, return_interm_layers=True):
        if return_interm_layers:
            self.strides = [8, 16, 32]
            self.num_channels = [512, 1024, 2048]
            self.conv_strides_to_apply = [2, 1, 1]     # kept for fidelity (unused)
            self.k_size_strides_to_apply = [3, 1, 1]   # kept for fidelity (unused)
        else:
            self.strides = [32]
            self.num_channels = [2048]
            self.conv_strides_to_apply = []
            self.k_size_strides_to_apply = []
        # Deterministic synthetic weights for the (synthetic) body.
        self.params = []
        for i, (s, cout) in enumerate(zip(self.strides, self.num_channels)):
            kw, kb = jax.random.split(jax.random.fold_in(key, i))
            fan_in = in_channels * s * s
            w = jax.random.normal(kw, (cout, in_channels, s, s), jnp.float32)
            w = w * (1.0 / jnp.sqrt(jnp.float32(fan_in)))
            b = 0.01 * jax.random.normal(kb, (cout,), jnp.float32)
            self.params.append((w, b, s))

    def forward(self, tensors, mask, channels_last=True):
        """tensors: (B, C, H, W) f32; mask: (B, H, W) bool (True = padding).

        Returns a list of (features, mask) per returned layer. Features are
        NHWC float32 by default (lane-dense, no extra transpose); pass
        channels_last=False for PyTorch's NCHW layout (same values).
        """
        out = []
        # Cast once outside the per-level loop: bf16 MXU operands + half the
        # im2col bytes per level.
        x_bf16 = tensors.astype(jnp.bfloat16)
        for (w, b, s) in self.params:
            feat = patchify_conv(x_bf16, w, b, s)                  # NHWC
            m = interpolate_mask_nearest(mask, feat.shape[1:3])    # mask resize
            if not channels_last:
                feat = jnp.transpose(feat, (0, 3, 1, 2))           # NCHW
            out.append((feat, m))
        return out


# ---------------------------------------------------------------------------
# Reference (pure JAX) for a single level, with bf16 operand rounding emulated.
# ---------------------------------------------------------------------------
def _ref_level_nhwc(x_f32, w, b, s):
    xb = x_f32.astype(jnp.bfloat16).astype(jnp.float32)
    wb = w.astype(jnp.bfloat16).astype(jnp.float32)
    y = jax.lax.conv_general_dilated(
        xb, wb, window_strides=(s, s), padding="VALID",
        dimension_numbers=("NCHW", "OIHW", "NCHW"))
    y = jnp.maximum(y + b[None, :, None, None], 0.0)
    return jnp.transpose(y, (0, 2, 3, 1))


if __name__ == "__main__":
    key = jax.random.PRNGKey(0)
    k_x, k_m, k_p = jax.random.split(key, 3)

    B, C, H, W = 2, 3, 64, 64
    x = jax.random.normal(k_x, (B, C, H, W), jnp.float32)
    # Deterministic padding mask: bottom/right region is padding (True).
    valid_h, valid_w = 48, 56
    ii = jnp.arange(H)[None, :, None]
    jj = jnp.arange(W)[None, None, :]
    mask = jnp.broadcast_to((ii >= valid_h) | (jj >= valid_w), (B, H, W))

    model = BackboneBase(k_p, in_channels=C, return_interm_layers=True)
    outputs = model.forward(x, mask)          # NHWC features by default

    for feat, m in outputs:
        jax.block_until_ready(feat)
        jax.block_until_ready(m)

    # Shape / dtype sanity (NHWC features).
    expected = list(zip(model.num_channels, model.strides))
    for (feat, m), (nc, s) in zip(outputs, expected):
        assert feat.shape == (B, H // s, W // s, nc), feat.shape
        assert feat.dtype == jnp.float32
        assert m.shape == (B, H // s, W // s) and m.dtype == jnp.bool_

    # Numerical sanity vs. pure-JAX conv reference (bf16-rounded operands).
    for (feat, m), (w, b, s) in zip(outputs, model.params):
        ref = _ref_level_nhwc(x, w, b, s)
        assert bool(jnp.allclose(feat, ref, atol=1e-2, rtol=1e-2)), (
            f"mismatch at stride {s}")
        # Mask matches the floor(dst*in/out) nearest rule by construction.
        rows = (jnp.arange(H // s) * H) // (H // s)
        cols = (jnp.arange(W // s) * W) // (W // s)
        assert bool(jnp.array_equal(m, mask[:, rows][:, :, cols]))

    print("KERNEL_OK")
</pallas_src>

<mosaic_0001>
module attributes {stable_mosaic.version = 11 : i64} {
  func.func @_gemm_bias_relu_kernel(%arg0: i32, %arg1: i32, %arg2: memref<128x192xbf16, #tpu.memory_space<vmem>>, %arg3: memref<192x256xbf16, #tpu.memory_space<vmem>>, %arg4: memref<1x256xf32, #tpu.memory_space<vmem>>, %arg5: memref<128x256xf32, #tpu.memory_space<vmem>>) attributes {dimension_semantics = [#tpu.dimension_semantics<parallel>, #tpu.dimension_semantics<parallel>], iteration_bounds = array<i64: 2, 1>, scalar_prefetch = 0 : i64, scratch_operands = 0 : i64, tpu.core_type = #tpu.core_type<tc>, window_params = [{transform_indices = @transform_0, window_bounds = array<i64: 128, 192>}, {transform_indices = @transform_1, window_bounds = array<i64: 192, 256>}, {transform_indices = @transform_2, window_bounds = array<i64: 1, 256>}, {transform_indices = @transform_3, window_bounds = array<i64: 128, 256>}]} {
    %c0 = arith.constant 0 : index
    %c0_0 = arith.constant 0 : index
    %0 = vector.load %arg2[%c0, %c0_0] : memref<128x192xbf16, #tpu.memory_space<vmem>>, vector<128x192xbf16>
    %c0_1 = arith.constant 0 : index
    %c0_2 = arith.constant 0 : index
    %1 = vector.load %arg3[%c0_1, %c0_2] : memref<192x256xbf16, #tpu.memory_space<vmem>>, vector<192x256xbf16>
    %cst = arith.constant dense<0.000000e+00> : vector<128x256xf32>
    %2 = tpu.matmul %0, %1, %cst {dimension_numbers = #tpu.dot_dimension_numbers<[1], [0], [0], [1], [0, 0, 1, 1], [], []>} : vector<128x192xbf16>, vector<192x256xbf16>, vector<128x256xf32> -> vector<128x256xf32>
    %c0_3 = arith.constant 0 : index
    %c0_4 = arith.constant 0 : index
    %3 = vector.load %arg4[%c0_3, %c0_4] : memref<1x256xf32, #tpu.memory_space<vmem>>, vector<1x256xf32>
    %4 = vector.broadcast %3 : vector<1x256xf32> to vector<128x256xf32>
    %5 = arith.addf %2, %4 : vector<128x256xf32>
    %cst_5 = arith.constant 0.000000e+00 : f32
    %6 = vector.broadcast %cst_5 : f32 to vector<128x256xf32>
    %7 = arith.maximumf %5, %6 : vector<128x256xf32>
    %c0_6 = arith.constant 0 : index
    %c0_7 = arith.constant 0 : index
    %8 = vector.load %arg5[%c0_6, %c0_7] : memref<128x256xf32, #tpu.memory_space<vmem>>, vector<128x256xf32>
    tpu.vector_store %arg5[%c0_6, %c0_7], %7 {strides = array<i32>} : memref<128x256xf32, #tpu.memory_space<vmem>>, vector<128x256xf32>,
    return
  }
  func.func @transform_0(%arg0: i32, %arg1: i32) -> (i32, i32) {
    %c0_i32 = arith.constant 0 : i32
    %c0_i32_0 = arith.constant 0 : i32
    return %arg1, %c0_i32 : i32, i32
  }
  func.func @transform_1(%arg0: i32, %arg1: i32) -> (i32, i32) {
    %c0_i32 = arith.constant 0 : i32
    %c0_i32_0 = arith.constant 0 : i32
    return %c0_i32, %arg0 : i32, i32
  }
  func.func @transform_2(%arg0: i32, %arg1: i32) -> (i32, i32) {
    %c0_i32 = arith.constant 0 : i32
    %c0_i32_0 = arith.constant 0 : i32
    return %c0_i32, %arg0 : i32, i32
  }
  func.func @transform_3(%arg0: i32, %arg1: i32) -> (i32, i32) {
    %c0_i32 = arith.constant 0 : i32
    return %arg1, %arg0 : i32, i32
  }
}

</mosaic_0001>

<bundles_post_ra>
// kernel: tpu_custom_call.1
= control target key start
LH: loop header
LB: loop body
LE: loop exit
PB: predicated region body
PF: predicated region fallthrough
CT: control target
= control target key end

     0   :  { %8 = vsyncpa [#allocation3], 0  ;;  %s1514_s0 = inlined_call_operand.vmem [shape: bf16[128,192], index: 0, kind: input, shape index: {}]   ;;  %s1515_s1 = inlined_call_operand.hbm [shape: bf16[192,512], index: 1, kind: input, shape index: {}]   ;;  %s1516_s2 = inlined_call_operand.vmem [shape: f32[1,512], index: 2, kind: input, shape index: {}]   ;;  %s1517_s3 = inlined_call_operand.hbm [shape: f32[128,512], index: 3, kind: output, shape index: {}]  }
   0x1   :  { %10 = vsyncpa [#allocation3 + $0x1], 0 }
   0x2   :  { %11 = vsyncpa [#allocation4], 0 }
   0x3   :  { %13 = vsyncpa [#allocation4 + $0x1], 0  ;;  %s1183_s12 = smov 0   ;;  %s1185_s13 = smov 0  }
   0x4   :  { %s1187_s14 = smov 0   ;;  %s1189_s15 = smov 0  }
   0x5   :  { %s1191_s16 = smov 0   ;;  %s1193_s17 = smov 0  }
   0x6 LB: > { %s822_s18 = sadd.s32 4294967295, %s1153_s17   ;;  %s823_s19 = sadd.s32 4294967294, %s1153_s17   ;;  %s1153_s17 = sphi %s1193_s17, %s19_s17   ;;  %s1149_s16 = sphi %s1191_s16, %s1531_s16   ;;  %s1145_s15 = sphi %s1189_s15, %s1530_s15   ;;  %s1141_s14 = sphi %s1187_s14, %s1529_s14   ;;  %s1137_s13 = sphi %s1185_s13, %s1528_s13   ;;  %s1133_s12 = sphi %s1183_s12, %s1527_s12  }
   0x7   : > { %s31_s20 = sadd.s32 1, %s1149_s16  ;;  %s64_s21 = sadd.s32 1, %s1141_s14 }
   0x8   : > { %p33_p0 = scmp.ge.s32.totalorder %s31_s20, 2  ;;  %p71_p1 = scmp.ne.s32.totalorder %s1141_s14, %s1137_s13 }
   0x9   : > { %p72_p2 = scmp.eq.s32.totalorder %s1153_s17, 0  ;;  %p77_p3 = scmp.ne.s32.totalorder %s1137_s13, %s1133_s12 }
   0xa   : > { %s1533_s20 = smov (%p33_p0, %s31_s20), 0  ;;  %p78_p5 = scmp.eq.s32.totalorder %s822_s18, 0 }
   0xb   : > { %p1224_p4 = por %p72_p2, %p71_p1  ;;  %s61_s23 = ssub.s32 %s1149_s16, %s1533_s20 }
   0xc   : > { %p129_p6 = scmp.eq.s32.totalorder %s822_s18, 1  ;;  %p62_p7 = scmp.eq.s32.totalorder %s61_s23, 0 }
   0xd   : > { %p1230_p8 = por %p78_p5, %p77_p3  ;;  %p135_p10 = scmp.eq.s32.totalorder %s823_s19, 1 }
   0xe   : > { %p1234_p9 = por %p129_p6, %p71_p1  ;;  %p925_p13 = scmp.lt.s32.totalorder %s1153_s17, 2 }
   0xf   : > { %s1239_s26 = scalar_select %p62_p7, %s1141_s14, %s64_s21  }
  0x10   : > { %s1521_s25 = scalar_select %p1234_p9, 1, 0 }
  0x11   : > { %p1241_p11 = por %p135_p10, %p77_p3  ;;  %s165_s28 = sand.u32 1, %s1141_s14  }
  0x12   : > { %s911_s29 = smul.u32 192, %s165_s28  ;;  %s885_s30 = sshll.u32 %s1149_s16, 7 }
  0x13   : > { %s1522_s27 = scalar_select %p1241_p11, 1, 0 }
  0x14   : > { %p1251_p0 = pnand %p925_p13, %p1224_p4  ;;  %s1258_s7 = scalar_lea.hbm %s1515_s1, %s885_s30 }
  0x15   : > { %s169_s8 = scalar_lea.vmem [#allocation2], %s911_s29  ;;  %s1262_s10 = scalar_lea.sflag [#allocation3], %s165_s28 }
  0x16   : > { %s176_s9 = sshll.u32 %s169_s8, 4  ;;  %s1041_s11 = scalar_lea.hbm %s1258_s7, 3072  ;;  %s1260_s9 = int_to_ptr.vmem [resolvable:$true] %s176_s9 }
  0x17   : > { %p1042_p1 = scmp.ne.s32.totalorder %s1258_s7, %s1041_s11  ;;  %p1043_p2 = pneg %p1251_p0 }
  0x18   : > { %s1046_s21 = scalar_lea.hbm %s1515_s1, 6144  ;;  %p1047_p5 = scmp.lt.u32.totalorder %s1258_s7, %s1515_s1 }
  0x19   : > { %p1044_p3 = pnand %p1043_p2, %p1042_p1  ;;  %p1048_p6 = scmp.lt.u32.totalorder %s1046_s21, %s1041_s11 }
  0x1a   : > { %p1050_p10 = scmp.lt.u32.totalorder %s1041_s11, %s1258_s7 }
  0x1b   : > { %p1045_p4 = pneg %p1044_p3  ;;  %p1049_p7 = por %p1048_p6, %p1047_p5 }
  0x1d   : > { %p1051_p13 = por %p1050_p10, %p1049_p7 }
  0x1f   : > { %p1052_p12 = pnand %p1051_p13, %p1045_p4 }
  0x21   : > { %1055 = shalt.err (!%p1052_p12)
}
  0x22   : > { %s1056_s28 = scalar_lea.vmem %s1260_s9, 3072  ;;  %s1155_s29 = smov [#allocation2]  }
  0x23   : > { %p1057_p1 = scmp.ne.s32.totalorder %s1260_s9, %s1056_s28  ;;  %s1061_s30 = sshll.u32 %s1155_s29, 4  ;;  %s1062_s30 = int_to_ptr.vmem [resolvable:$false] %s1061_s30 }
  0x24   : > { %s1063_s5 = scalar_lea.vmem %s1062_s30, 6144  ;;  %p1064_p9 = scmp.lt.s32.totalorder %s1260_s9, %s1062_s30 }
  0x25   : > { %p1059_p3 = pnand %p1057_p1, %p1043_p2  ;;  %p1065_p5 = scmp.lt.s32.totalorder %s1063_s5, %s1056_s28 }
  0x27   : > { %p1060_p11 = pneg %p1059_p3  ;;  %p1066_p6 = por %p1065_p5, %p1064_p9 }
  0x29   : > { %p1067_p7 = pnand %p1066_p6, %p1060_p11 }
  0x2b   : > { %1070 = shalt.err (!%p1067_p7)
}
  0x2c   : > { %s1156_s6 = smov 256   ;;  %s1157_s8 = smov 128  }
  0x2d   : > { %s1158_s11 = smov 8   ;;  %p829_p12 = scmp.ge.s32.totalorder %s1153_s17, 1 }
  0x2e   : > { %920 = dma.hbm_to_vmem [thread:$0]  (!%p1251_p0), %s1258_s7, 3072, %s1260_s9, %s1262_s10, %s1156_s6, %s1157_s8, %s1158_s11  }
  0x2f   : > { %p192_p2 = scmp.lt.s32.totalorder %s1153_s17, 3 }
  0x31   : > { %p193_p4 = pnand %p829_p12, %p192_p2 }
  0x32   : > { %s1293_s18 = sand.u32 (!%p193_p4), 1, %s1137_s13  }
  0x33   : > { %196 = sbr.rel (%p193_p4) target bundleno = 367 (0x16f), region = 32  ;;  %s199_s21 = scalar_lea.sflag (!%p193_p4), [#allocation3], %s1293_s18 }
  0x34   : > { %s912_s19 = smul.u32 (!%p193_p4), 192, %s1293_s18 }
  0x36   : > { %s1297_s22 = scalar_lea.vmem (!%p193_p4), [#allocation2], %s912_s19 }
  0x3a   : > { %1124 = dma.done.wait (%p1230_p8), %s199_s21, 3072  }
  0x3b   : > { %1126 = vsyncadd (%p1230_p8), %s199_s21, 4294964224  ;;  %v981_v0 = vld [vmem:[%s1297_s22 + $0x4] ss:$8 sps:$4 sm:$0xff]   ;;  %v983_v1 = vld [vmem:[%s1297_s22] ss:$8 sps:$4 sm:$0xff]   ;;  %vm495_vm0 = vcmask 523264   ;;  %v293_v40 = vlaneseq }
  0x3c   : > { %520 = vmatprep.subr.bf16.mxu0 %v981_v0  ;;  %887 = vmatprep.subr.bf16.mxu1 %v981_v0  ;;  %v984_v2 = vld [vmem:[%s1297_s22 + $0x14] ss:$8 sps:$4 sm:$0xff]   ;;  %v986_v3 = vld [vmem:[%s1297_s22 + $0x10] ss:$8 sps:$4 sm:$0xff]   ;;  %v987_v4 = vld [vmem:[%s1297_s22 + $0x24] ss:$8 sps:$4 sm:$0xff]  }
  0x3d   : > { %521 = vmatpush1.bf16.msra.mxu0 %v983_v1  ;;  %899 = vmatpush1.bf16.msra.mxu1 %v983_v1  ;;  %v989_v5 = vld [vmem:[%s1297_s22 + $0x20] ss:$8 sps:$4 sm:$0xff]   ;;  %v990_v6 = vld [vmem:[%s1297_s22 + $0x34] ss:$8 sps:$4 sm:$0xff]   ;;  %v992_v7 = vld [vmem:[%s1297_s22 + $0x30] ss:$8 sps:$4 sm:$0xff]  }
  0x3e   : > { %522 = vmatprep.subr.bf16.mxu0 %v984_v2  ;;  %888 = vmatprep.subr.bf16.mxu1 %v984_v2  ;;  %v993_v8 = vld [vmem:[%s1297_s22 + $0x44] ss:$8 sps:$4 sm:$0xff]   ;;  %v995_v9 = vld [vmem:[%s1297_s22 + $0x40] ss:$8 sps:$4 sm:$0xff]   ;;  %v996_v10 = vld [vmem:[%s1297_s22 + $0x54] ss:$8 sps:$4 sm:$0xff]  }
  0x3f   : > { %v1019_v11 = vld [vmem:[%s1514_s0 + $0x4] ss:$8 sps:$4 sm:$0xff]   ;;  %v998_v13 = vld [vmem:[%s1297_s22 + $0x50] ss:$8 sps:$4 sm:$0xff]   ;;  %v1001_v15 = vld [vmem:[%s1297_s22 + $0x60] ss:$8 sps:$4 sm:$0xff]  }
  0x40   : > { %v1022_v12 = vld [vmem:[%s1514_s0 + $0x44] ss:$8 sps:$4 sm:$0xff]   ;;  %872 = vmatprep.mubr.msk.bf16.mxu0 %vm495_vm0, %v1019_v11  ;;  %v1002_v16 = vld [vmem:[%s1297_s22 + $0x74] ss:$8 sps:$4 sm:$0xff]   ;;  %v1004_v17 = vld [vmem:[%s1297_s22 + $0x70] ss:$8 sps:$4 sm:$0xff]  }
  0x41   : > { %523 = vmatpush1.bf16.msra.mxu0 %v986_v3  ;;  %900 = vmatpush1.bf16.msra.mxu1 %v986_v3  ;;  %v999_v14 = vld [vmem:[%s1297_s22 + $0x64] ss:$8 sps:$4 sm:$0xff]   ;;  %v1007_v19 = vld [vmem:[%s1297_s22 + $0x80] ss:$8 sps:$4 sm:$0xff]   ;;  %v1008_v20 = vld [vmem:[%s1297_s22 + $0x94] ss:$8 sps:$4 sm:$0xff]  }
  0x42   : > { %524 = vmatprep.subr.bf16.mxu0 %v987_v4  ;;  %889 = vmatprep.subr.bf16.mxu1 %v987_v4  ;;  %v1005_v18 = vld [vmem:[%s1297_s22 + $0x84] ss:$8 sps:$4 sm:$0xff]   ;;  %v1010_v21 = vld [vmem:[%s1297_s22 + $0x90] ss:$8 sps:$4 sm:$0xff]   ;;  %v1013_v23 = vld [vmem:[%s1297_s22 + $0xa0] ss:$8 sps:$4 sm:$0xff]  }
  0x43   : > { %876 = vmatprep.mubr.msk.bf16.mxu1 %vm495_vm0, %v1022_v12  ;;  %v1011_v22 = vld [vmem:[%s1297_s22 + $0xa4] ss:$8 sps:$4 sm:$0xff]   ;;  %v1014_v24 = vld [vmem:[%s1297_s22 + $0xb4] ss:$8 sps:$4 sm:$0xff]   ;;  %v1016_v25 = vld [vmem:[%s1297_s22 + $0xb0] ss:$8 sps:$4 sm:$0xff]  }
  0x44   : > { %v1017_v26 = vld [vmem:[%s1514_s0] ss:$8 sps:$4 sm:$0xff]   ;;  %v1023_v28 = vld [vmem:[%s1514_s0 + $0x14] ss:$8 sps:$4 sm:$0xff]   ;;  %v1027_v30 = vld [vmem:[%s1514_s0 + $0x10] ss:$8 sps:$4 sm:$0xff]  }
  0x45   : > { %525 = vmatpush1.bf16.msra.mxu0 %v989_v5  ;;  %901 = vmatpush1.bf16.msra.mxu1 %v989_v5  ;;  %v1020_v27 = vld [vmem:[%s1514_s0 + $0x40] ss:$8 sps:$4 sm:$0xff]   ;;  %v1025_v29 = vld [vmem:[%s1514_s0 + $0x54] ss:$8 sps:$4 sm:$0xff]   ;;  %v1028_v31 = vld [vmem:[%s1514_s0 + $0x50] ss:$8 sps:$4 sm:$0xff]  }
  0x46   : > { %526 = vmatprep.subr.bf16.mxu0 %v990_v6  ;;  %890 = vmatprep.subr.bf16.mxu1 %v990_v6  ;;  %v1029_v32 = vld [vmem:[%s1514_s0 + $0x24] ss:$8 sps:$4 sm:$0xff]   ;;  %v1033_v34 = vld [vmem:[%s1514_s0 + $0x20] ss:$8 sps:$4 sm:$0xff]   ;;  %v1035_v36 = vld [vmem:[%s1514_s0 + $0x34] ss:$8 sps:$4 sm:$0xff]  }
  0x47   : > { %v1031_v33 = vld [vmem:[%s1514_s0 + $0x64] ss:$8 sps:$4 sm:$0xff]   ;;  %v1034_v35 = vld [vmem:[%s1514_s0 + $0x60] ss:$8 sps:$4 sm:$0xff]   ;;  %v1037_v37 = vld [vmem:[%s1514_s0 + $0x74] ss:$8 sps:$4 sm:$0xff]  }
  0x48   : > { %v1039_v38 = vld [vmem:[%s1514_s0 + $0x30] ss:$8 sps:$4 sm:$0xff]   ;;  %s831_s24 = sshll.u32 %s1145_s15, 1  ;;  %v294_v41 = vshrl.u32 %v293_v40, 7  ;;  %s830_s10 = sshll.u32 %s1293_s18, 8 }
  0x49   : > { %527 = vmatpush1.bf16.msra.mxu0 %v992_v7  ;;  %902 = vmatpush1.bf16.msra.mxu1 %v992_v7  ;;  %v1040_v39 = vld [vmem:[%s1514_s0 + $0x70] ss:$8 sps:$4 sm:$0xff]   ;;  %p244_p8 = scmp.lt.s32.totalorder %s831_s24, 3  ;;  %s1400_s23 = scalar_lea.vmem [#allocation5], %s830_s10 }
  0x4a   : > { %528 = vmatprep.subr.bf16.mxu0 %v993_v8  ;;  %891 = vmatprep.subr.bf16.mxu1 %v993_v8  ;;  %v295_v42 = vsub.s32 0, %v294_v41  ;;  %v299_v44 = vsub.s32 1, %v294_v41  ;;  %s886_s28 = sshll.u32 %s1145_s15, 8  ;;  %s714_s29 = sshll.u32 %s1400_s23, 4  ;;  %s1459_s29 = int_to_ptr.vmem [resolvable:$true] %s714_s29 }
  0x4b   : > { %s1535_s24 = smov (!%p244_p8, %s831_s24), 3  ;;  %s1455_s5 = scalar_lea.hbm %s1517_s3, %s886_s28 }
  0x4c   : > { %s246_s9 = scalar_lea.vmem %s1516_s2, %s1535_s24  ;;  %s698_s6 = scalar_lea.sflag [#allocation4], %s1293_s18 }
  0x4d   : > { %529 = vmatpush1.bf16.msra.mxu0 %v995_v9  ;;  %903 = vmatpush1.bf16.msra.mxu1 %v995_v9  ;;  %v291_v43 = vld [vmem:[%s246_s9] sm:$0x3]  ;;  %s1071_s8 = scalar_lea.vmem %s1459_s29, 4096  ;;  %p1524_p11 = scmp.ne.s32.totalorder %s1521_s25, 0 }
  0x4e   : > { %530 = vmatprep.subr.bf16.mxu0 %v996_v10  ;;  %892 = vmatprep.subr.bf16.mxu1 %v996_v10  ;;  %v1387_v45 = vrot.slane %v291_v43, %v295_v42  ;;  %v1389_v46 = vrot.slane %v291_v43, %v299_v44  ;;  %p1072_p9 = scmp.ne.s32.totalorder %s1459_s29, %s1071_s8  ;;  %s1159_s11 = smov [#allocation5]  }
  0x4f   : > { %s1075_s19 = sshll.u32 %s1159_s11, 4  ;;  %s1076_s19 = int_to_ptr.vmem [resolvable:$false] %s1075_s19 }
  0x50   : > { %p1073_p0 = pnand %p1072_p9, %p1524_p11  ;;  %s1077_s21 = scalar_lea.vmem %s1076_s19, 8192 }
  0x51   : > { %531 = vmatpush1.bf16.msra.mxu0 %v998_v13  ;;  %904 = vmatpush1.bf16.msra.mxu1 %v998_v13  ;;  %p1078_p13 = scmp.lt.s32.totalorder %s1459_s29, %s1076_s19  ;;  %p1079_p1 = scmp.lt.s32.totalorder %s1077_s21, %s1071_s8 }
  0x52   : > { %532 = vmatprep.subr.bf16.mxu0 %v999_v14  ;;  %893 = vmatprep.subr.bf16.mxu1 %v999_v14  ;;  %p1074_p10 = pneg %p1073_p0 }
  0x53   : > { %p1080_p3 = por %p1079_p1, %p1078_p13 }
  0x55   : > { %533 = vmatpush1.bf16.msra.mxu0 %v1001_v15  ;;  %905 = vmatpush1.bf16.msra.mxu1 %v1001_v15  ;;  %p1081_p5 = pnand %p1080_p3, %p1074_p10 }
  0x56   : > { %534 = vmatprep.subr.bf16.mxu0 %v1002_v16  ;;  %894 = vmatprep.subr.bf16.mxu1 %v1002_v16 }
  0x59   : > { %535 = vmatpush1.bf16.msra.mxu0 %v1004_v17  ;;  %906 = vmatpush1.bf16.msra.mxu1 %v1004_v17 }
  0x5a   : > { %536 = vmatprep.subr.bf16.mxu0 %v1005_v18  ;;  %895 = vmatprep.subr.bf16.mxu1 %v1005_v18 }
  0x5d   : > { %537 = vmatpush1.bf16.msra.mxu0 %v1007_v19  ;;  %907 = vmatpush1.bf16.msra.mxu1 %v1007_v19 }
  0x5e   : > { %538 = vmatprep.subr.bf16.mxu0 %v1008_v20  ;;  %896 = vmatprep.subr.bf16.mxu1 %v1008_v20 }
  0x61   : > { %539 = vmatpush1.bf16.msra.mxu0 %v1010_v21  ;;  %908 = vmatpush1.bf16.msra.mxu1 %v1010_v21 }
  0x62   : > { %540 = vmatprep.subr.bf16.mxu0 %v1011_v22  ;;  %897 = vmatprep.subr.bf16.mxu1 %v1011_v22 }
  0x65   : > { %541 = vmatpush1.bf16.msra.mxu0 %v1013_v23  ;;  %909 = vmatpush1.bf16.msra.mxu1 %v1013_v23 }
  0x66   : > { %542 = vmatprep.subr.bf16.mxu0 %v1014_v24  ;;  %898 = vmatprep.subr.bf16.mxu1 %v1014_v24 }
  0x69   : > { %543 = vmatpush1.bf16.msra.mxu0 %v1016_v25  ;;  %910 = vmatpush1.bf16.msra.mxu1 %v1016_v25 }
  0x6c   : > { %553 = vmatmul.mubr.bf16.vlgmr.msra.gmra.mrb[0].mxu0 %v1017_v26  ;;  %593 = vmatmul.mubr.bf16.vlgmr.msra.gmra.mrb[0].mxu1 %v1020_v27 }
  0x6d   : > { %873 = vmatprep.mubr.msk.bf16.mxu0 %vm495_vm0, %v1023_v28  ;;  %877 = vmatprep.mubr.msk.bf16.mxu1 %vm495_vm0, %v1025_v29 }
  0x74   : > { %563 = vmatmul.mubr.bf16.gmra.mrb[4].mxu0 %v1027_v30  ;;  %603 = vmatmul.mubr.bf16.gmra.mrb[4].mxu1 %v1028_v31 }
  0x75   : > { %874 = vmatprep.mubr.msk.bf16.mxu0 %vm495_vm0, %v1029_v32  ;;  %878 = vmatprep.mubr.msk.bf16.mxu1 %vm495_vm0, %v1031_v33 }
  0x7c   : > { %573 = vmatmul.mubr.bf16.gmra.mrb[8].mxu0 %v1033_v34  ;;  %613 = vmatmul.mubr.bf16.gmra.mrb[8].mxu1 %v1034_v35 }
  0x7d   : > { %875 = vmatprep.mubr.msk.bf16.mxu0 %vm495_vm0, %v1035_v36  ;;  %879 = vmatprep.mubr.msk.bf16.mxu1 %vm495_vm0, %v1037_v37 }
  0x84   : > { %583 = vmatmul.mubr.bf16.gmra.mrb[12].mxu0 %v1039_v38  ;;  %623 = vmatmul.mubr.bf16.gmra.mrb[12].mxu1 %v1040_v39 }
 0x13f   : > { %v554_v47 = vpop.f32.mrb[0].mxu0  ;;  %v594_v48 = vpop.f32.mrb[0].mxu1 }
 0x140   : > { %v555_v49 = vadd.f32 %v554_v47, %v1387_v45  ;;  %v595_v50 = vadd.f32 %v594_v48, %v1387_v45  ;;  %v556_v51 = vpop.f32.mrb[1].mxu0  ;;  %v596_v52 = vpop.f32.mrb[1].mxu1 }
 0x141   : > { %v557_v53 = vadd.f32 %v556_v51, %v1389_v46  ;;  %v597_v54 = vadd.f32 %v596_v52, %v1389_v46  ;;  %v558_v55 = vpop.f32.mrb[2].mxu0  ;;  %v598_v56 = vpop.f32.mrb[2].mxu1 }
 0x142   : > { %v633_v57 = vmax.f32 %v555_v49, 0.0  ;;  %v649_v58 = vmax.f32 %v595_v50, 0.0  ;;  %v559_v59 = vadd.f32 %v558_v55, %v1387_v45  ;;  %v599_v60 = vadd.f32 %v598_v56, %v1387_v45  ;;  %v560_v61 = vpop.f32.mrb[3].mxu0  ;;  %v600_v62 = vpop.f32.mrb[3].mxu1 }
 0x143   : > { %v634_v63 = vmax.f32 %v557_v53, 0.0  ;;  %v650_v0 = vmax.f32 %v597_v54, 0.0  ;;  %v561_v1 = vadd.f32 %v560_v61, %v1389_v46  ;;  %v601_v2 = vadd.f32 %v600_v62, %v1389_v46 }
 0x144   : > { %665 = vst [vmem:[%s1400_s23] sm:$0xff] %v633_v57  ;;  %681 = vst [vmem:[%s1400_s23 + $0x80] sm:$0xff] %v649_v58  ;;  %v635_v3 = vmax.f32 %v559_v59, 0.0  ;;  %v651_v4 = vmax.f32 %v599_v60, 0.0 }
 0x145   : > { %666 = vst [vmem:[%s1400_s23 + $0x8] sm:$0xff] %v634_v63  ;;  %682 = vst [vmem:[%s1400_s23 + $0x88] sm:$0xff] %v650_v0  ;;  %v636_v5 = vmax.f32 %v561_v1, 0.0  ;;  %v652_v6 = vmax.f32 %v601_v2, 0.0 }
 0x146   : > { %667 = vst [vmem:[%s1400_s23 + $0x10] sm:$0xff] %v635_v3  ;;  %683 = vst [vmem:[%s1400_s23 + $0x90] sm:$0xff] %v651_v4 }
 0x147   : > { %668 = vst [vmem:[%s1400_s23 + $0x18] sm:$0xff] %v636_v5  ;;  %684 = vst [vmem:[%s1400_s23 + $0x98] sm:$0xff] %v652_v6  ;;  %v564_v7 = vpop.f32.mrb[4].mxu0  ;;  %v604_v8 = vpop.f32.mrb[4].mxu1 }
 0x148   : > { %v565_v9 = vadd.f32 %v564_v7, %v1387_v45  ;;  %v605_v10 = vadd.f32 %v604_v8, %v1387_v45  ;;  %v566_v11 = vpop.f32.mrb[5].mxu0  ;;  %v606_v12 = vpop.f32.mrb[5].mxu1 }
 0x149   : > { %v567_v13 = vadd.f32 %v566_v11, %v1389_v46  ;;  %v607_v14 = vadd.f32 %v606_v12, %v1389_v46  ;;  %v568_v15 = vpop.f32.mrb[6].mxu0  ;;  %v608_v16 = vpop.f32.mrb[6].mxu1 }
 0x14a   : > { %v637_v17 = vmax.f32 %v565_v9, 0.0  ;;  %v653_v18 = vmax.f32 %v605_v10, 0.0  ;;  %v569_v19 = vadd.f32 %v568_v15, %v1387_v45  ;;  %v609_v20 = vadd.f32 %v608_v16, %v1387_v45  ;;  %v570_v21 = vpop.f32.mrb[7].mxu0  ;;  %v610_v22 = vpop.f32.mrb[7].mxu1 }
 0x14b   : > { %v638_v23 = vmax.f32 %v567_v13, 0.0  ;;  %v654_v24 = vmax.f32 %v607_v14, 0.0  ;;  %v571_v25 = vadd.f32 %v570_v21, %v1389_v46  ;;  %v611_v26 = vadd.f32 %v610_v22, %v1389_v46 }
 0x14c   : > { %669 = vst [vmem:[%s1400_s23 + $0x20] sm:$0xff] %v637_v17  ;;  %685 = vst [vmem:[%s1400_s23 + $0xa0] sm:$0xff] %v653_v18  ;;  %v639_v27 = vmax.f32 %v569_v19, 0.0  ;;  %v655_v28 = vmax.f32 %v609_v20, 0.0 }
 0x14d   : > { %670 = vst [vmem:[%s1400_s23 + $0x28] sm:$0xff] %v638_v23  ;;  %686 = vst [vmem:[%s1400_s23 + $0xa8] sm:$0xff] %v654_v24  ;;  %v640_v29 = vmax.f32 %v571_v25, 0.0  ;;  %v656_v30 = vmax.f32 %v611_v26, 0.0 }
 0x14e   : > { %671 = vst [vmem:[%s1400_s23 + $0x30] sm:$0xff] %v639_v27  ;;  %687 = vst [vmem:[%s1400_s23 + $0xb0] sm:$0xff] %v655_v28 }
 0x14f   : > { %672 = vst [vmem:[%s1400_s23 + $0x38] sm:$0xff] %v640_v29  ;;  %688 = vst [vmem:[%s1400_s23 + $0xb8] sm:$0xff] %v656_v30  ;;  %v574_v31 = vpop.f32.mrb[8].mxu0  ;;  %v614_v32 = vpop.f32.mrb[8].mxu1 }
 0x150   : > { %v575_v33 = vadd.f32 %v574_v31, %v1387_v45  ;;  %v615_v34 = vadd.f32 %v614_v32, %v1387_v45  ;;  %v576_v35 = vpop.f32.mrb[9].mxu0  ;;  %v616_v36 = vpop.f32.mrb[9].mxu1 }
 0x151   : > { %v577_v37 = vadd.f32 %v576_v35, %v1389_v46  ;;  %v617_v38 = vadd.f32 %v616_v36, %v1389_v46  ;;  %v578_v39 = vpop.f32.mrb[10].mxu0  ;;  %v618_v40 = vpop.f32.mrb[10].mxu1 }
 0x152   : > { %v641_v41 = vmax.f32 %v575_v33, 0.0  ;;  %v657_v42 = vmax.f32 %v615_v34, 0.0  ;;  %v579_v43 = vadd.f32 %v578_v39, %v1387_v45  ;;  %v619_v44 = vadd.f32 %v618_v40, %v1387_v45  ;;  %v580_v47 = vpop.f32.mrb[11].mxu0  ;;  %v620_v48 = vpop.f32.mrb[11].mxu1 }
 0x153   : > { %v642_v49 = vmax.f32 %v577_v37, 0.0  ;;  %v658_v50 = vmax.f32 %v617_v38, 0.0  ;;  %v581_v51 = vadd.f32 %v580_v47, %v1389_v46  ;;  %v621_v52 = vadd.f32 %v620_v48, %v1389_v46 }
 0x154   : > { %673 = vst [vmem:[%s1400_s23 + $0x40] sm:$0xff] %v641_v41  ;;  %689 = vst [vmem:[%s1400_s23 + $0xc0] sm:$0xff] %v657_v42  ;;  %v643_v53 = vmax.f32 %v579_v43, 0.0  ;;  %v659_v54 = vmax.f32 %v619_v44, 0.0 }
 0x155   : > { %674 = vst [vmem:[%s1400_s23 + $0x48] sm:$0xff] %v642_v49  ;;  %690 = vst [vmem:[%s1400_s23 + $0xc8] sm:$0xff] %v658_v50  ;;  %v644_v55 = vmax.f32 %v581_v51, 0.0  ;;  %v660_v56 = vmax.f32 %v621_v52, 0.0 }
 0x156   : > { %675 = vst [vmem:[%s1400_s23 + $0x50] sm:$0xff] %v643_v53  ;;  %691 = vst [vmem:[%s1400_s23 + $0xd0] sm:$0xff] %v659_v54 }
 0x157   : > { %676 = vst [vmem:[%s1400_s23 + $0x58] sm:$0xff] %v644_v55  ;;  %692 = vst [vmem:[%s1400_s23 + $0xd8] sm:$0xff] %v660_v56  ;;  %v584_v57 = vpop.f32.mrb[12].mxu0  ;;  %v624_v58 = vpop.f32.mrb[12].mxu1 }
 0x158   : > { %v585_v59 = vadd.f32 %v584_v57, %v1387_v45  ;;  %v625_v60 = vadd.f32 %v624_v58, %v1387_v45  ;;  %v586_v61 = vpop.f32.mrb[13].mxu0  ;;  %v626_v62 = vpop.f32.mrb[13].mxu1 }
 0x159   : > { %v587_v63 = vadd.f32 %v586_v61, %v1389_v46  ;;  %v627_v0 = vadd.f32 %v626_v62, %v1389_v46  ;;  %v588_v1 = vpop.f32.mrb[14].mxu0  ;;  %v628_v2 = vpop.f32.mrb[14].mxu1 }
 0x15a   : > { %v645_v3 = vmax.f32 %v585_v59, 0.0  ;;  %v661_v4 = vmax.f32 %v625_v60, 0.0  ;;  %v589_v5 = vadd.f32 %v588_v1, %v1387_v45  ;;  %v629_v6 = vadd.f32 %v628_v2, %v1387_v45  ;;  %v590_v7 = vpop.f32.mrb[15].mxu0  ;;  %v630_v8 = vpop.f32.mrb[15].mxu1 }
 0x15b   : > { %v646_v9 = vmax.f32 %v587_v63, 0.0  ;;  %v662_v10 = vmax.f32 %v627_v0, 0.0  ;;  %v591_v11 = vadd.f32 %v590_v7, %v1389_v46  ;;  %v631_v12 = vadd.f32 %v630_v8, %v1389_v46 }
 0x15c   : > { %677 = vst [vmem:[%s1400_s23 + $0x60] sm:$0xff] %v645_v3  ;;  %693 = vst [vmem:[%s1400_s23 + $0xe0] sm:$0xff] %v661_v4  ;;  %v647_v45 = vmax.f32 %v589_v5, 0.0  ;;  %v663_v13 = vmax.f32 %v629_v6, 0.0 }
 0x15d   : > { %678 = vst [vmem:[%s1400_s23 + $0x68] sm:$0xff] %v646_v9  ;;  %694 = vst [vmem:[%s1400_s23 + $0xe8] sm:$0xff] %v662_v10  ;;  %v648_v14 = vmax.f32 %v591_v11, 0.0  ;;  %v664_v15 = vmax.f32 %v631_v12, 0.0 }
 0x15e   : > { %679 = vst [vmem:[%s1400_s23 + $0x70] sm:$0xff] %v647_v45  ;;  %695 = vst [vmem:[%s1400_s23 + $0xf0] sm:$0xff] %v663_v13 }
 0x15f   : > { %680 = vst [vmem:[%s1400_s23 + $0x78] sm:$0xff] %v648_v14  ;;  %696 = vst [vmem:[%s1400_s23 + $0xf8] sm:$0xff] %v664_v15 }
 0x160   : > { %1084 = shalt.err (!%p1081_p5)
}
 0x161   : > { %s1085_s22 = scalar_lea.hbm %s1455_s5, 4096  ;;  %s1089_s7 = scalar_lea.hbm %s1517_s3, 8192 }
 0x162   : > { %p1086_p6 = scmp.ne.s32.totalorder %s1455_s5, %s1085_s22  ;;  %p1090_p2 = scmp.lt.u32.totalorder %s1455_s5, %s1517_s3 }
 0x163   : > { %p1091_p4 = scmp.lt.u32.totalorder %s1089_s7, %s1085_s22  ;;  %p1093_p9 = scmp.lt.u32.totalorder %s1085_s22, %s1455_s5 }
 0x164   : > { %p1087_p7 = pnand %p1086_p6, %p1524_p11 }
 0x165   : > { %p1092_p8 = por %p1091_p4, %p1090_p2 }
 0x166   : > { %p1088_p12 = pneg %p1087_p7 }
 0x167   : > { %p1094_p0 = por %p1093_p9, %p1092_p8 }
 0x169   : > { %p1095_p10 = pnand %p1094_p0, %p1088_p12 }
 0x16b   : > { %1098 = shalt.err (!%p1095_p10)
}
 0x16c   : > { %s1160_s23 = smov 256   ;;  %s1161_s28 = smov 512  }
 0x16d   : > { %s1162_s15 = smov 16  }
 0x16e   : > { %915 = dma.vmem_to_hbm [thread:$0]  (%p1524_p11), %s1459_s29, 4096, %s1455_s5, %s698_s6, %s1160_s23, %s1161_s28, %s1162_s15  }
 0x16f PF: > { %s729_s30 = sand.u32 1, %s1133_s12   ;;  %p1525_p13 = scmp.ne.s32.totalorder %s1522_s27, 0 }
 0x170   : > { %p1526_p1 = scmp.ge.s32.totalorder %s1153_s17, 2  ;;  %s730_s8 = scalar_lea.sflag [#allocation4], %s729_s30 }
 0x172   : > { %p922_p3 = pnand %p1526_p1, %p1525_p13 }
 0x174   : > { %1128 = dma.done.wait (!%p922_p3), %s730_s8, 4096  }
 0x175   : > { %1130 = vsyncadd (!%p922_p3), %s730_s8, 4294963200  ;;  %s19_s17 = sadd.s32 1, %s1153_s17   ;;  %s1527_s12 = smov %s1137_s13 }
 0x176   : > { %p16_p5 = scmp.ge.s32.totalorder %s19_s17, 4   ;;  %s1528_s13 = smov %s1141_s14 }
 0x177   : > { %s1529_s14 = smov %s1239_s26  ;;  %s1530_s15 = smov %s1149_s16 }
 0x178   : > { %s1531_s16 = smov %s1533_s20  ;;  %18 = sbr.rel (!%p16_p5) target bundleno = 6 (0x6), region = 83 }
 0x17f   :  { %735 = vsyncpa [#allocation3], 1 }
 0x180   :  { %737 = vsyncpa [#allocation3 + $0x1], 1 }
 0x181   :  { %738 = vsyncpa [#allocation4], 1 }
 0x182   :  { %740 = vsyncpa [#allocation4 + $0x1], 1 }

</bundles_post_ra>
